<compile_context>
chip_gen: v6e
topology: v6e:2x2x1
jax: 0.10.0
libtpu: 0.0.40
codegen_flags: <defaults>
</compile_context>

<pallas_src>
from functools import partial

import jax
import jax.numpy as jnp
from jax.experimental import pallas as pl
from jax.experimental.pallas import tpu as pltpu

N_EMBD = 384      # C, fixed by the module
BLOCK_SIZE = 30   # max sequence length (tril buffer size)


def _head_kernel(x_ref, w_ref, o_ref, *, num_heads, head_size):
    # x_ref: (Bb, Tp, C) bf16 activation slab   (Tp is a multiple of 8)
    # w_ref: (C, 3*nh*H) bf16 fused [q_all | k_all | v_all] (scale folded into q)
    # o_ref: (Bb, Tp, nh*H) f32
    Bb, Tp, C = x_ref.shape
    nh, H = num_heads, head_size
    NHH = nh * H

    # Fused QKV projection, batch folded into the MXU M dimension:
    # (Bb*Tp, C) @ (C, 3*nh*H), bf16 in / f32 accumulate.
    x2d = x_ref[...].reshape(Bb * Tp, C)
    qkv = jnp.dot(x2d, w_ref[...], preferred_element_type=jnp.float32)
    qkv = qkv.reshape(Bb, Tp, 3 * NHH)

    # Causal mask (also hides padded key columns) built once from 2-D iotas and
    # broadcast over the batch dimension.
    row = jax.lax.broadcasted_iota(jnp.int32, (Tp, Tp), 0)
    col = jax.lax.broadcasted_iota(jnp.int32, (Tp, Tp), 1)
    mask = (col <= row)[None]                       # (1, Tp, Tp)
    neg_inf = jnp.float32(-jnp.inf)

    outs = []
    for h in range(nh):                             # static unroll over fused heads
        q = qkv[:, :, h * H:(h + 1) * H].astype(jnp.bfloat16)
        k = qkv[:, :, NHH + h * H:NHH + (h + 1) * H].astype(jnp.bfloat16)
        v = qkv[:, :, 2 * NHH + h * H:2 * NHH + (h + 1) * H].astype(jnp.bfloat16)

        # Scores: contract over H directly (no explicit k transpose), f32 accum.
        s = jax.lax.dot_general(
            q, k, dimension_numbers=(((2,), (2,)), ((0,), (0,))),
            preferred_element_type=jnp.float32)     # (Bb, Tp, Tp)
        s = jnp.where(mask, s, neg_inf)

        # Numerically-stable softmax; reciprocal goes to the (free) EUP slot.
        m = jnp.max(s, axis=-1, keepdims=True)
        e = jnp.exp(s - m)
        p = e * pl.reciprocal(jnp.sum(e, axis=-1, keepdims=True), approx=True)

        # TODO(synk): dropout(p=0.2) on `p` is eval-mode identity; training mode
        # would use pltpu.prng_seed / pltpu.prng_random_bits.

        out_h = jax.lax.dot_general(
            p.astype(jnp.bfloat16), v,
            dimension_numbers=(((2,), (1,)), ((0,), (0,))),
            preferred_element_type=jnp.float32)     # (Bb, Tp, H)
        outs.append(out_h)

    out = outs[0] if nh == 1 else jnp.concatenate(outs, axis=-1)   # lane-dense store
    o_ref[...] = out.astype(o_ref.dtype)


def _pick_block_b(B, Tp, target_rows=2048, min_split_rows=1024):
    """Batch block so Bb*Tp ~ target_rows MXU rows per grid step.

    Only split into >=2 (parallel) steps -- to feed both v7x TensorCores -- when
    each step would still carry >= min_split_rows rows; on single-TC v5e/v6e the
    extra ~0.35us/step is then negligible.  Tiny workloads stay as one step.
    """
    bb = min(B, max(1, target_rows // Tp))
    if B * Tp >= 2 * min_split_rows and pl.cdiv(B, bb) < 2:
        bb = pl.cdiv(B, 2)
    steps = pl.cdiv(B, bb)
    return pl.cdiv(B, steps)        # balance the last step (minimize batch padding)


def prepare_fused_weights(wk, wq, wv):
    """wk/wq/wv: (nh, C, H) transposed nn.Linear weights -> fused (C, 3*nh*H) bf16.

    Layout [q_all | k_all | v_all] with the C**-0.5 attention scale folded into the
    query columns.  Call once and reuse (hoists concat + cast out of the per-call path).
    """
    nh, C, H = wq.shape
    scale = jnp.float32(C) ** jnp.float32(-0.5)

    def flat(w):                                    # (nh, C, H) -> (C, nh*H)
        return jnp.transpose(w, (1, 0, 2)).reshape(C, nh * H)

    w = jnp.concatenate([flat(wq * scale), flat(wk), flat(wv)], axis=1)
    return w.astype(jnp.bfloat16)


@partial(jax.jit, static_argnames=("num_heads", "head_size"))
def fused_heads_forward(x, w_fused, *, num_heads, head_size):
    """x: (B, T, C); w_fused: (C, 3*nh*H) from prepare_fused_weights -> (B, T, nh*H)."""
    B, T, C = x.shape
    nh, H = num_heads, head_size
    assert C == N_EMBD and T <= BLOCK_SIZE
    assert w_fused.shape == (C, 3 * nh * H)

    # Pad T to a sublane multiple and B to a multiple of the batch block.
    Tp = pl.cdiv(T, 8) * 8
    bb = _pick_block_b(B, Tp)
    Bp = pl.cdiv(B, bb) * bb

    xp = x.astype(jnp.bfloat16)                     # halve the x DMA
    if (Bp, Tp) != (B, T):
        xp = jnp.pad(xp, ((0, Bp - B), (0, Tp - T), (0, 0)))

    grid = (Bp // bb,)
    cost = pl.CostEstimate(
        flops=2 * Bp * Tp * C * (3 * nh * H) + nh * 2 * (2 * Bp * Tp * Tp * H),
        transcendentals=nh * (Bp * Tp * Tp + Bp * Tp),
        bytes_accessed=2 * Bp * Tp * C + 2 * C * 3 * nh * H + 4 * Bp * Tp * nh * H,
    )

    out = pl.pallas_call(
        partial(_head_kernel, num_heads=nh, head_size=H),
        out_shape=jax.ShapeDtypeStruct((Bp, Tp, nh * H), jnp.float32),
        grid_spec=pltpu.PrefetchScalarGridSpec(
            num_scalar_prefetch=0,
            grid=grid,
            in_specs=[
                pl.BlockSpec((bb, Tp, C), lambda i: (i, 0, 0)),        # batch slab of x
                pl.BlockSpec((C, 3 * nh * H), lambda i: (0, 0)),       # fused QKV weight
            ],
            out_specs=pl.BlockSpec((bb, Tp, nh * H), lambda i: (i, 0, 0)),
        ),
        compiler_params=pltpu.CompilerParams(
            dimension_semantics=("parallel",),
        ),
        cost_estimate=cost,
    )(xp, w_fused)

    return out[:B, :T].astype(x.dtype)


def head_forward(x, wk, wq, wv):
    """Single PyTorch `Head` forward (eval mode).

    x: (B, T, C) f32; wk/wq/wv: (C, H) f32 (transposed nn.Linear weights) -> (B, T, H).
    Note: H=32 gives a lane-sparse (32-wide) output; for production, fuse the heads
    of the surrounding MultiHeadAttention via prepare_fused_weights/fused_heads_forward
    so the output is >=128 lanes wide.
    """
    w_fused = prepare_fused_weights(wk[None], wq[None], wv[None])
    return fused_heads_forward(x, w_fused, num_heads=1, head_size=wq.shape[-1])


def _reference(x, wk, wq, wv):
    """Pure-JAX reference mirroring the PyTorch forward (eval mode)."""
    B, T, C = x.shape
    k = x @ wk
    q = x @ wq
    v = x @ wv
    wei = (q @ jnp.swapaxes(k, -2, -1)) * (C ** -0.5)
    mask = jnp.tril(jnp.ones((T, T), dtype=bool))
    wei = jnp.where(mask[None], wei, -jnp.inf)
    wei = jax.nn.softmax(wei, axis=-1)
    return wei @ v


if __name__ == "__main__":
    C, H = N_EMBD, 32
    key = jax.random.PRNGKey(0)
    kx, kk, kq, kv = jax.random.split(key, 4)

    # nn.Linear(n_embd, head_size, bias=False): weight (H, C); store transposed (C, H).
    bound = 1.0 / (C ** 0.5)
    wk = jax.random.uniform(kk, (C, H), jnp.float32, -bound, bound)
    wq = jax.random.uniform(kq, (C, H), jnp.float32, -bound, bound)
    wv = jax.random.uniform(kv, (C, H), jnp.float32, -bound, bound)

    # Tolerances cover bf16-in/f32-accumulate MXU math + EUP approximate reciprocal.
    TOL = dict(atol=2e-2, rtol=2e-2)

    # 1) Single-head module parity (B=2, T=8).
    x = jax.random.normal(kx, (2, 8, C), dtype=jnp.float32)
    out = jax.block_until_ready(head_forward(x, wk, wq, wv))
    ref = _reference(x, wk, wq, wv)
    assert out.shape == (2, 8, H)
    assert jnp.allclose(out, ref, **TOL), float(jnp.max(jnp.abs(out - ref)))

    # 2) Padding path: T = block_size (not a sublane multiple), odd batch size.
    x2 = jax.random.normal(jax.random.fold_in(kx, 1), (5, BLOCK_SIZE, C), jnp.float32)
    out2 = jax.block_until_ready(head_forward(x2, wk, wq, wv))
    ref2 = _reference(x2, wk, wq, wv)
    assert out2.shape == (5, BLOCK_SIZE, H)
    assert jnp.allclose(out2, ref2, **TOL), float(jnp.max(jnp.abs(out2 - ref2)))

    # 3) Fused multi-head path: 4 heads -> lane-dense 128-wide output store.
    nh = 4
    kws = jax.random.split(jax.random.fold_in(key, 2), 3)
    wk4 = jax.random.uniform(kws[0], (nh, C, H), jnp.float32, -bound, bound)
    wq4 = jax.random.uniform(kws[1], (nh, C, H), jnp.float32, -bound, bound)
    wv4 = jax.random.uniform(kws[2], (nh, C, H), jnp.float32, -bound, bound)
    x3 = jax.random.normal(jax.random.fold_in(kx, 3), (4, 16, C), jnp.float32)
    w_fused = prepare_fused_weights(wk4, wq4, wv4)
    out3 = jax.block_until_ready(
        fused_heads_forward(x3, w_fused, num_heads=nh, head_size=H))
    ref3 = jnp.concatenate(
        [_reference(x3, wk4[h], wq4[h], wv4[h]) for h in range(nh)], axis=-1)
    assert out3.shape == (4, 16, nh * H)
    assert jnp.allclose(out3, ref3, **TOL), float(jnp.max(jnp.abs(out3 - ref3)))

    print("KERNEL_OK")
</pallas_src>

<mosaic_0001>
module attributes {stable_mosaic.version = 11 : i64} {
  func.func @_head_kernel(%arg0: i32, %arg1: memref<2x8x384xbf16, #tpu.memory_space<vmem>>, %arg2: memref<384x96xbf16, #tpu.memory_space<vmem>>, %arg3: memref<2x8x32xf32, #tpu.memory_space<vmem>>) attributes {dimension_semantics = [#tpu.dimension_semantics<parallel>], iteration_bounds = array<i64: 1>, scalar_prefetch = 0 : i64, scratch_operands = 0 : i64, tpu.core_type = #tpu.core_type<tc>, window_params = [{transform_indices = @transform_0, window_bounds = array<i64: 2, 8, 384>}, {pipeline_mode = #tpu.pipeline_mode<synchronous>, transform_indices = @transform_1, window_bounds = array<i64: 384, 96>}, {transform_indices = @transform_2, window_bounds = array<i64: 2, 8, 32>}]} {
    %c0 = arith.constant 0 : index
    %c0_0 = arith.constant 0 : index
    %c0_1 = arith.constant 0 : index
    %0 = vector.load %arg1[%c0, %c0_0, %c0_1] : memref<2x8x384xbf16, #tpu.memory_space<vmem>>, vector<2x8x384xbf16>
    %1 = vector.shape_cast %0 : vector<2x8x384xbf16> to vector<16x384xbf16>
    %c0_2 = arith.constant 0 : index
    %c0_3 = arith.constant 0 : index
    %2 = vector.load %arg2[%c0_2, %c0_3] : memref<384x96xbf16, #tpu.memory_space<vmem>>, vector<384x96xbf16>
    %cst = arith.constant dense<0.000000e+00> : vector<16x96xf32>
    %3 = tpu.matmul %1, %2, %cst {dimension_numbers = #tpu.dot_dimension_numbers<[1], [0], [0], [1], [0, 0, 1, 1], [], []>} : vector<16x384xbf16>, vector<384x96xbf16>, vector<16x96xf32> -> vector<16x96xf32>
    %4 = vector.shape_cast %3 : vector<16x96xf32> to vector<2x8x96xf32>
    %5 = tpu.iota {dimensions = array<i32: 0>} : vector<8x8xi32>
    %6 = tpu.iota {dimensions = array<i32: 1>} : vector<8x8xi32>
    %7 = arith.cmpi sle, %6, %5 : vector<8x8xi32>
    %8 = vector.shape_cast %7 : vector<8x8xi1> to vector<1x8x8xi1>
    %9 = vector.extract_strided_slice %4 {offsets = [0, 0, 0], sizes = [2, 8, 32], strides = [1, 1, 1]} : vector<2x8x96xf32> to vector<2x8x32xf32>
    %10 = arith.truncf %9 : vector<2x8x32xf32> to vector<2x8x32xbf16>
    %11 = vector.extract_strided_slice %4 {offsets = [0, 0, 32], sizes = [2, 8, 32], strides = [1, 1, 1]} : vector<2x8x96xf32> to vector<2x8x32xf32>
    %12 = arith.truncf %11 : vector<2x8x32xf32> to vector<2x8x32xbf16>
    %13 = vector.extract_strided_slice %4 {offsets = [0, 0, 64], sizes = [2, 8, 32], strides = [1, 1, 1]} : vector<2x8x96xf32> to vector<2x8x32xf32>
    %14 = arith.truncf %13 : vector<2x8x32xf32> to vector<2x8x32xbf16>
    %cst_4 = arith.constant dense<0.000000e+00> : vector<2x8x8xf32>
    %15 = tpu.matmul %10, %12, %cst_4 {dimension_numbers = #tpu.dot_dimension_numbers<[2], [2], [1], [1], [0, 0, 0, 1, 1, 1], [0], [0]>} : vector<2x8x32xbf16>, vector<2x8x32xbf16>, vector<2x8x8xf32> -> vector<2x8x8xf32>
    %cst_5 = arith.constant 0xFF800000 : f32
    %16 = vector.shape_cast %8 : vector<1x8x8xi1> to vector<1x8x8xi1>
    %17 = vector.broadcast %16 : vector<1x8x8xi1> to vector<2x8x8xi1>
    %18 = vector.broadcast %cst_5 : f32 to vector<2x8x8xf32>
    %19 = arith.select %17, %15, %18 : vector<2x8x8xi1>, vector<2x8x8xf32>
    %cst_6 = arith.constant dense<0xFF800000> : vector<2x8xf32>
    %20 = vector.multi_reduction <maximumf>, %19, %cst_6 [2] : vector<2x8x8xf32> to vector<2x8xf32>
    %21 = vector.shape_cast %20 : vector<2x8xf32> to vector<2x8x1xf32>
    %22 = vector.broadcast %21 : vector<2x8x1xf32> to vector<2x8x8xf32>
    %23 = arith.subf %19, %22 : vector<2x8x8xf32>
    %24 = math.exp %23 : vector<2x8x8xf32>
    %cst_7 = arith.constant dense<0.000000e+00> : vector<2x8xf32>
    %25 = vector.multi_reduction <add>, %24, %cst_7 [2] : vector<2x8x8xf32> to vector<2x8xf32>
    %26 = vector.shape_cast %25 : vector<2x8xf32> to vector<2x8x1xf32>
    %27 = tpu.reciprocal %26 {approx = true} : vector<2x8x1xf32> -> vector<2x8x1xf32>
    %28 = vector.broadcast %27 : vector<2x8x1xf32> to vector<2x8x8xf32>
    %29 = arith.mulf %24, %28 : vector<2x8x8xf32>
    %30 = arith.truncf %29 : vector<2x8x8xf32> to vector<2x8x8xbf16>
    %cst_8 = arith.constant dense<0.000000e+00> : vector<2x8x32xf32>
    %31 = tpu.matmul %30, %14, %cst_8 {dimension_numbers = #tpu.dot_dimension_numbers<[2], [1], [1], [2], [0, 0, 0, 1, 1, 2], [0], [0]>} : vector<2x8x8xbf16>, vector<2x8x32xbf16>, vector<2x8x32xf32> -> vector<2x8x32xf32>
    %c0_9 = arith.constant 0 : index
    %c0_10 = arith.constant 0 : index
    %c0_11 = arith.constant 0 : index
    %32 = vector.load %arg3[%c0_9, %c0_10, %c0_11] : memref<2x8x32xf32, #tpu.memory_space<vmem>>, vector<2x8x32xf32>
    tpu.vector_store %arg3[%c0_9, %c0_10, %c0_11], %31 {strides = array<i32>} : memref<2x8x32xf32, #tpu.memory_space<vmem>>, vector<2x8x32xf32>,
    return
  }
  func.func @transform_0(%arg0: i32) -> (i32, i32, i32) {
    %c0_i32 = arith.constant 0 : i32
    %c0_i32_0 = arith.constant 0 : i32
    %c0_i32_1 = arith.constant 0 : i32
    return %arg0, %c0_i32, %c0_i32_0 : i32, i32, i32
  }
  func.func @transform_1(%arg0: i32) -> (i32, i32) {
    %c0_i32 = arith.constant 0 : i32
    %c0_i32_0 = arith.constant 0 : i32
    %c0_i32_1 = arith.constant 0 : i32
    return %c0_i32, %c0_i32_0 : i32, i32
  }
  func.func @transform_2(%arg0: i32) -> (i32, i32, i32) {
    %c0_i32 = arith.constant 0 : i32
    %c0_i32_0 = arith.constant 0 : i32
    %c0_i32_1 = arith.constant 0 : i32
    return %arg0, %c0_i32, %c0_i32_0 : i32, i32, i32
  }
}

</mosaic_0001>

<bundles_post_ra>
// kernel: fused_heads_forward.1
= control target key start
LH: loop header
LB: loop body
LE: loop exit
PB: predicated region body
PF: predicated region fallthrough
CT: control target
= control target key end

     0   :  { %v736_v1 = vmov 0.0   ;;  %vm737_vm0 = vmmov 0   ;;  %s878_s0 = inlined_call_operand.vmem [shape: bf16[2,8,384], index: 0, kind: input, shape index: {}]   ;;  %s879_s1 = inlined_call_operand.vmem [shape: bf16[384,96], index: 1, kind: input, shape index: {}]   ;;  %s880_s2 = inlined_call_operand.hbm [shape: f32[2,8,32], index: 2, kind: output, shape index: {}]  }
   0x1   :  { %v678_v0 = vld [vmem:[%s879_s1 + $0x78] sm:$0xff]   ;;  %627 = vmatprep.subr.bf16.mxu1 %v736_v1  ;;  %643 = vmatprep.mubr.msk.bf16.mxu1 %vm737_vm0, %v736_v1  ;;  %v681_v4 = vld [vmem:[%s879_s1 + $0x70] sm:$0xff]   ;;  %v684_v7 = vld [vmem:[%s879_s1 + $0x68] sm:$0xff]  }
   0x2   :  { %v679_v2 = vld [vmem:[%s879_s1 + $0xb8] sm:$0xff]   ;;  %588 = vmatprep.subr.bf16.mxu0 %v678_v0  ;;  %v682_v5 = vld [vmem:[%s879_s1 + $0xb0] sm:$0xff]   ;;  %v685_v8 = vld [vmem:[%s879_s1 + $0xa8] sm:$0xff]  }
   0x3   :  { %v680_v3 = vld [vmem:[%s879_s1 + $0x38] sm:$0xff]   ;;  %628 = vmatpush3.bf16.msra.mxu1 %v679_v2  ;;  %v683_v6 = vld [vmem:[%s879_s1 + $0x30] sm:$0xff]   ;;  %v686_v9 = vld [vmem:[%s879_s1 + $0x28] sm:$0xff]  }
   0x4   :  { %589 = vmatpush3.bf16.msra.mxu0 %v680_v3  ;;  %629 = vmatprep.subr.bf16.mxu1 %v736_v1  ;;  %v687_v10 = vld [vmem:[%s879_s1 + $0x60] sm:$0xff]   ;;  %v690_v13 = vld [vmem:[%s879_s1 + $0x58] sm:$0xff]   ;;  %v693_v16 = vld [vmem:[%s879_s1 + $0x50] sm:$0xff]  }
   0x5   :  { %590 = vmatprep.subr.bf16.mxu0 %v681_v4  ;;  %v688_v11 = vld [vmem:[%s879_s1 + $0xa0] sm:$0xff]   ;;  %v691_v14 = vld [vmem:[%s879_s1 + $0x98] sm:$0xff]   ;;  %v694_v17 = vld [vmem:[%s879_s1 + $0x90] sm:$0xff]  }
   0x6   :  { %v689_v12 = vld [vmem:[%s879_s1 + $0x20] sm:$0xff]   ;;  %v692_v15 = vld [vmem:[%s879_s1 + $0x18] sm:$0xff]   ;;  %v695_v18 = vld [vmem:[%s879_s1 + $0x10] sm:$0xff]  }
   0x7   :  { %630 = vmatpush3.bf16.msra.mxu1 %v682_v5  ;;  %v696_v19 = vld [vmem:[%s879_s1 + $0x48] sm:$0xff]   ;;  %v699_v22 = vld [vmem:[%s879_s1 + $0x40] sm:$0xff]  }
   0x8   :  { %591 = vmatpush3.bf16.msra.mxu0 %v683_v6  ;;  %631 = vmatprep.subr.bf16.mxu1 %v736_v1  ;;  %v697_v20 = vld [vmem:[%s879_s1 + $0x88] sm:$0xff]   ;;  %v704_v23 = vld [vmem:[%s878_s0 + $0x4] ss:$12 sps:$4 sm:$0xff]  }
   0x9   :  { %592 = vmatprep.subr.bf16.mxu0 %v684_v7  ;;  %v698_v21 = vld [vmem:[%s879_s1 + $0x8] sm:$0xff]  }
   0xb   :  { %632 = vmatpush3.bf16.msra.mxu1 %v685_v8 }
   0xc   :  { %593 = vmatpush3.bf16.msra.mxu0 %v686_v9  ;;  %633 = vmatprep.subr.bf16.mxu1 %v736_v1 }
   0xd   :  { %594 = vmatprep.subr.bf16.mxu0 %v687_v10 }
   0xf   :  { %634 = vmatpush3.bf16.msra.mxu1 %v688_v11 }
  0x10   :  { %595 = vmatpush3.bf16.msra.mxu0 %v689_v12  ;;  %635 = vmatprep.subr.bf16.mxu1 %v736_v1 }
  0x11   :  { %596 = vmatprep.subr.bf16.mxu0 %v690_v13 }
  0x13   :  { %636 = vmatpush3.bf16.msra.mxu1 %v691_v14 }
  0x14   :  { %597 = vmatpush3.bf16.msra.mxu0 %v692_v15  ;;  %637 = vmatprep.subr.bf16.mxu1 %v736_v1 }
  0x15   :  { %598 = vmatprep.subr.bf16.mxu0 %v693_v16 }
  0x17   :  { %638 = vmatpush3.bf16.msra.mxu1 %v694_v17 }
  0x18   :  { %599 = vmatpush3.bf16.msra.mxu0 %v695_v18  ;;  %639 = vmatprep.subr.bf16.mxu1 %v736_v1 }
  0x19   :  { %600 = vmatprep.subr.bf16.mxu0 %v696_v19 }
  0x1a   :  { %7 = vsyncpa [#allocation3], 0  ;;  %v700_v24 = vld [vmem:[%s879_s1 + $0x80] sm:$0xff]   ;;  %257 = vmatprep.mubr.bf16.mxu0 %v704_v23  ;;  %v705_v26 = vld [vmem:[%s878_s0 + $0x8] ss:$12 sps:$4 sm:$0xff]   ;;  %vm317_vm1 = vcmask 261120   ;;  %v307_v46 = vlaneseq }
  0x1b   :  { %640 = vmatpush3.bf16.msra.mxu1 %v697_v20  ;;  %v701_v25 = vld [vmem:[%s879_s1] sm:$0xff]   ;;  %vm417_vm3 = vcmask 64512   ;;  %s739_s1 = smov 64   ;;  %vm447_vm4 = vcmask 1043456   ;;  %s740_s7 = smov [#allocation2]  }
  0x1c   :  { %601 = vmatpush3.bf16.msra.mxu0 %v698_v21  ;;  %641 = vmatprep.subr.bf16.mxu1 %v736_v1  ;;  %v702_v27 = vld [vmem:[%s878_s0] ss:$12 sps:$4 sm:$0xff]   ;;  %s738_s0 = smov 96   ;;  %v308_v47 = vshrl.u32 %v307_v46, 7  ;;  %v310_v48 = vand.u32 127, %v307_v46  ;;  %s546_s8 = sshll.u32 %s740_s7, 4  ;;  %s547_s8 = int_to_ptr.vmem [resolvable:$true] %s546_s8 }
  0x1d   :  { %602 = vmatprep.subr.bf16.mxu0 %v699_v22  ;;  %s714_s9 = scalar_lea.vmem %s547_s8, 256  ;;  %p719_p1 = scmp.lt.s32.totalorder %s547_s8, %s547_s8 }
  0x1e   :  { %vm311_vm2 = vcmp.le.s32.totalorder %v310_v48, %v308_v47  ;;  %p715_p0 = scmp.ne.s32.totalorder %s547_s8, %s714_s9  ;;  %p720_p2 = scmp.lt.s32.totalorder %s714_s9, %s714_s9 }
  0x1f   :  { %642 = vmatpush3.bf16.msra.mxu1 %v700_v24 }
  0x20   :  { %603 = vmatpush3.bf16.msra.mxu0 %v701_v25  ;;  %653 = vmatprep.subr.bf16.mxu1 %v736_v1  ;;  %p721_p3 = por %p720_p2, %p719_p1 }
  0x21   :  { %647 = vmatprep.subr.bf16.mxu0 %v736_v1 }
  0x22   :  { %644 = vmatmul.mubr.bf16.vlgmr.msra.gmra.mxu1 %v705_v26  ;;  %p722_p4 = pnand %p721_p3, %p715_p0 }
  0x23   :  { %258 = vmatmul.mubr.bf16.vlgmr.msra.gmra.mxu0 %v702_v27  ;;  %655 = vmatprep.mubr.msk.bf16.mxu1 %vm737_vm0, %v736_v1 }
  0x24   :  { %649 = vmatprep.mubr.msk.bf16.mxu0 %vm737_vm0, %v736_v1 }
  0xe2   :  { %v300_v28 = vpop.f32.mrf.mxu1 }
  0xe3   :  { %v604_v29 = vpop.f32.mrf.mxu0 }
  0xe4   :  { %v645_v30 = vpop.f32.mrf.mxu1 }
  0xe5   :  { %v605_v31 = vpop.f32.mrf.mxu0 }
  0xe6   :  { %v606_v32 = vadd.f32 %v605_v31, %v604_v29  ;;  %v303_v33 = vpop.f32.mrf.mxu1 }
  0xe7   :  { %v607_v34 = vpop.f32.mrf.mxu0 }
  0xe8   :  { %v301_v35 = vadd.f32 %v606_v32, %v300_v28  ;;  %v646_v36 = vpop.f32.mrf.mxu1 }
  0xe9   :  { %v608_v37 = vpop.f32.mrf.mxu0 }
  0xea   :  { %v312_v38 = vpack.c.bf16 %v301_v35, %v301_v35  ;;  %v609_v39 = vadd.f32 %v608_v37, %v607_v34 }
  0xec   :  { %v304_v40 = vadd.f32 %v609_v39, %v303_v33  ;;  %315 = vrot.lane.b32.xlu0 %v312_v38, %s738_s0 }
  0xee   :  { %v313_v41 = vpack.c.bf16 %v304_v40, %v304_v40 }
  0xf0   :  { %365 = vrot.lane.b32.xlu0 %v313_v41, %s738_s0 }
 0x15e   :  { %v316_v42 = vpop.permute.xlu0 %315 }
 0x15f   :  { %v322_v43 = vsel %vm317_vm1, %v316_v42, 0 }
 0x160   :  { %648 = vmatpush3.bf16.xpose.msra.mxu0 %v322_v43 }
 0x161   :  { %659 = vmatprep.subr.bf16.mxu0 %v736_v1 }
 0x162   :  { %v366_v44 = vpop.permute.xlu0 %365 }
 0x163   :  { %v371_v45 = vsel %vm317_vm1, %v366_v44, 0 }
 0x164   :  { %654 = vmatpush3.bf16.xpose.msra.mxu1 %v371_v45 }
 0x165   :  { %665 = vmatprep.subr.bf16.mxu1 %v736_v1 }
 0x167   :  { %650 = vmatmul.mubr.msk.bf16.vlgmr.msra.gmra.mxu0 %vm317_vm1, %v312_v38 }
 0x168   :  { %661 = vmatprep.mubr.msk.bf16.mxu0 %vm737_vm0, %v736_v1 }
 0x16b   :  { %656 = vmatmul.mubr.msk.bf16.vlgmr.msra.gmra.mxu1 %vm317_vm1, %v313_v41 }
 0x16c   :  { %667 = vmatprep.mubr.msk.bf16.mxu1 %vm737_vm0, %v736_v1 }
 0x227   :  { %v358_v49 = vpop.f32.mrf.mxu0 }
 0x228   :  { %v415_v50 = vsel %vm311_vm2, %v358_v49, -inf }
 0x229   :  { %v651_v51 = vpop.f32.mrf.mxu0  ;;  %v418_v52 = vsel %vm417_vm3, %v415_v50, -inf }
 0x22a   :  { %419 = vmax.xlane.f32.xlu1 %v418_v52 }
 0x22b   :  { %v361_v53 = vpop.f32.mrf.mxu0  ;;  %v407_v54 = vpop.f32.mrf.mxu1 }
 0x22c   :  { %v416_v55 = vsel %vm311_vm2, %v407_v54, -inf }
 0x22d   :  { %v652_v56 = vpop.f32.mrf.mxu0  ;;  %v657_v57 = vpop.f32.mrf.mxu1  ;;  %v421_v58 = vsel %vm417_vm3, %v416_v55, -inf }
 0x22e   :  { %422 = vmax.xlane.f32.xlu1 %v421_v58 }
 0x22f   :  { %v410_v59 = vpop.f32.mrf.mxu1 }
 0x231   :  { %v658_v60 = vpop.f32.mrf.mxu1 }
 0x23f   :  { %442 = vrot.lane.b32.xlu1 %v312_v38, %s739_s1 }
 0x2b3   :  { %v420_v61 = vpop.xlane.xlu1 %419 }
 0x2b4   :  { %v424_v62 = vsub.f32 %v415_v50, %v420_v61 }
 0x2b6   :  { %v426_v63 = vmul.f32 1.442695, %v424_v62 }
 0x2b7   :  { %v423_v0 = vpop.xlane.xlu1 %422 }
 0x2b8   :  { %706 = vpow2.f32 %v426_v63  ;;  %v425_v1 = vsub.f32 %v416_v55, %v423_v0 }
 0x2ba   :  { %v428_v2 = vmul.f32 1.442695, %v425_v1 }
 0x2bb   :  { %v443_v3 = vpop.permute.xlu1 %442 }
 0x2bc   :  { %708 = vpow2.f32 %v428_v2  ;;  %v449_v4 = vsel %vm447_vm4, %v443_v3, 0 }
 0x2bd   :  { %660 = vmatpush3.bf16.msra.mxu0 %v449_v4 }
 0x2c5   :  { %v707_v5 = vpop.eup %706 }
 0x2c6   :  { %v430_v6 = vsel %vm417_vm3, %v707_v5, 0.0 }
 0x2c7   :  { %431 = vadd.xlane.f32.xlu0 %v430_v6 }
 0x2c9   :  { %v709_v7 = vpop.eup %708 }
 0x2ca   :  { %v433_v8 = vsel %vm417_vm3, %v709_v7, 0.0 }
 0x2cb   :  { %434 = vadd.xlane.f32.xlu1 %v433_v8 }
 0x2dc   :  { %491 = vrot.lane.b32.xlu1 %v313_v41, %s739_s1 }
 0x350   :  { %v432_v9 = vpop.xlane.xlu0 %431 }
 0x351   :  { %710 = vrcp.f32 %v432_v9 }
 0x354   :  { %v435_v10 = vpop.xlane.xlu1 %434 }
 0x355   :  { %712 = vrcp.f32 %v435_v10 }
 0x358   :  { %v492_v11 = vpop.permute.xlu1 %491 }
 0x359   :  { %v497_v12 = vsel %vm447_vm4, %v492_v11, 0 }
 0x35a   :  { %666 = vmatpush3.bf16.msra.mxu1 %v497_v12 }
 0x35e   :  { %v711_v13 = vpop.eup %710 }
 0x35f   :  { %v438_v14 = vmul.f32 %v711_v13, %v707_v5 }
 0x361   :  { %v440_v15 = vpack.c.bf16 %v438_v14, %v438_v14 }
 0x362   :  { %v713_v16 = vpop.eup %712 }
 0x363   :  { %662 = vmatmul.mubr.msk.bf16.vlgmr.msra.gmra.mxu0 %vm417_vm3, %v440_v15  ;;  %v439_v17 = vmul.f32 %v713_v16, %v709_v7 }
 0x365   :  { %v441_v18 = vpack.c.bf16 %v439_v17, %v439_v17 }
 0x367   :  { %668 = vmatmul.mubr.msk.bf16.vlgmr.msra.gmra.mxu1 %vm417_vm3, %v441_v18 }
 0x423   :  { %v485_v19 = vpop.f32.mrf.mxu0 }
 0x424   :  { %539 = vst.msk [vmem:[#allocation2] sm:$0xff] %vm317_vm1, %v485_v19 }
 0x425   :  { %v663_v20 = vpop.f32.mrf.mxu0 }
 0x427   :  { %v488_v21 = vpop.f32.mrf.mxu0  ;;  %v533_v22 = vpop.f32.mrf.mxu1 }
 0x428   :  { %540 = vst.msk [vmem:[#allocation2 + $0x8] sm:$0xff] %vm317_vm1, %v533_v22 }
 0x429   :  { %v664_v23 = vpop.f32.mrf.mxu0  ;;  %v669_v24 = vpop.f32.mrf.mxu1 }
 0x42a   :  { %725 = shalt.err (!%p722_p4)
}
 0x42b   :  { %s741_s10 = smov 128   ;;  %s742_s11 = smov 8   ;;  %v536_v25 = vpop.f32.mrf.mxu1 }
 0x42c   :  { %552 = dma.vmem_to_hbm [thread:$0]  %s547_s8, 256, %s880_s2, [#allocation3], %s741_s10, %s741_s10, %s742_s11  }
 0x42d   :  { %v670_v26 = vpop.f32.mrf.mxu1 }
 0x42e   :  { %734 = dma.done.wait [#allocation3], 256  }
 0x42f   :  { %735 = vsyncadd [#allocation3], 4294967040 }
 0x430   :  { %556 = vsyncpa [#allocation3], 1 }

</bundles_post_ra>
